<compile_context>
chip_gen: v5e
topology: v5e:2x2
jax: 0.10.0
libtpu: 0.0.40
codegen_flags: <defaults>
</compile_context>

<pallas_src>
import jax
import jax.numpy as jnp
from jax.experimental import pallas as pl
from jax.experimental.pallas import tpu as pltpu


_LANE = 1024       # lane-dense slab width (multiple of 128)
_TILE_ROWS = 512   # 512 * 1024 * 4B = 2 MiB per f32 buffer (multiple of 8 and 16)


def _lambda_kernel(x_ref, o_ref):
    # The stored function is applied here, inside the kernel (VPU/EUP elementwise).
    o_ref[...] = jnp.tanh(x_ref[...])


@jax.jit
def lambda_forward(x):
    """Pallas implementation of Lambda(torch.tanh).forward(x). Preserves shape/dtype."""
    orig_shape = x.shape
    orig_dtype = x.dtype
    total = x.size
    itemsize = jnp.dtype(orig_dtype).itemsize

    flat = jnp.ravel(x)

    # Aligned portion runs through the tiled Pallas kernel; ragged tail (< _LANE
    # elements) is computed outside the kernel to avoid a full-array pad copy.
    main = (total // _LANE) * _LANE
    tail = total - main

    pieces = []
    if main > 0:
        rows = main // _LANE
        # Tile rows: 512 (8/16-aligned) when possible, else the full (small) extent.
        tr = _TILE_ROWS if rows >= _TILE_ROWS else rows
        slab = flat[:main].reshape(rows, _LANE)

        out = pl.pallas_call(
            _lambda_kernel,
            out_shape=jax.ShapeDtypeStruct((rows, _LANE), orig_dtype),
            grid=(pl.cdiv(rows, tr),),
            in_specs=[pl.BlockSpec((tr, _LANE), lambda i: (i, 0))],
            out_specs=pl.BlockSpec((tr, _LANE), lambda i: (i, 0)),
            input_output_aliases={0: 0},
            compiler_params=pltpu.CompilerParams(
                dimension_semantics=("parallel",)),
            cost_estimate=pl.CostEstimate(
                flops=0,
                transcendentals=main,
                bytes_accessed=2 * main * itemsize),
        )(slab)
        pieces.append(out.reshape(-1))

    if tail > 0:
        # Tiny ragged tail handled in plain JAX (cheaper than padding the whole array).
        pieces.append(jnp.tanh(flat[main:]))

    out_flat = pieces[0] if len(pieces) == 1 else jnp.concatenate(pieces)
    return out_flat.reshape(orig_shape)


if __name__ == "__main__":
    key = jax.random.PRNGKey(0)
    # Small NCHW input consistent with typical usage: batch=2, channels=4, spatial=16x16
    x = jax.random.normal(key, (2, 4, 16, 16), dtype=jnp.float32)

    y = lambda_forward(x)
    jax.block_until_ready(y)

    # Correctness check against the pure-JAX reference of the stored function.
    ref = jnp.tanh(x)
    assert y.shape == x.shape and y.dtype == x.dtype
    assert jnp.allclose(y, ref, atol=1e-5, rtol=1e-5)

    print("KERNEL_OK")
</pallas_src>

<mosaic_0001>
module attributes {stable_mosaic.version = 11 : i64} {
  func.func @_lambda_kernel(%arg0: i32, %arg1: memref<2x1024xf32, #tpu.memory_space<vmem>>, %arg2: memref<2x1024xf32, #tpu.memory_space<vmem>>) attributes {dimension_semantics = [#tpu.dimension_semantics<parallel>], iteration_bounds = array<i64: 1>, scalar_prefetch = 0 : i64, scratch_operands = 0 : i64, tpu.core_type = #tpu.core_type<tc>, window_params = [{transform_indices = @transform_0, window_bounds = array<i64: 2, 1024>}, {transform_indices = @transform_1, window_bounds = array<i64: 2, 1024>}]} {
    %c0 = arith.constant 0 : index
    %c0_0 = arith.constant 0 : index
    %0 = vector.load %arg1[%c0, %c0_0] : memref<2x1024xf32, #tpu.memory_space<vmem>>, vector<2x1024xf32>
    %1 = math.tanh %0 : vector<2x1024xf32>
    %c0_1 = arith.constant 0 : index
    %c0_2 = arith.constant 0 : index
    %2 = vector.load %arg2[%c0_1, %c0_2] : memref<2x1024xf32, #tpu.memory_space<vmem>>, vector<2x1024xf32>
    tpu.vector_store %arg2[%c0_1, %c0_2], %1 {strides = array<i32>} : memref<2x1024xf32, #tpu.memory_space<vmem>>, vector<2x1024xf32>,
    return
  }
  func.func @transform_0(%arg0: i32) -> (i32, i32) {
    %c0_i32 = arith.constant 0 : i32
    %c0_i32_0 = arith.constant 0 : i32
    return %arg0, %c0_i32 : i32, i32
  }
  func.func @transform_1(%arg0: i32) -> (i32, i32) {
    %c0_i32 = arith.constant 0 : i32
    %c0_i32_0 = arith.constant 0 : i32
    return %arg0, %c0_i32 : i32, i32
  }
}

</mosaic_0001>

<bundles_post_ra>
// kernel: lambda_forward.1
= control target key start
LH: loop header
LB: loop body
LE: loop exit
PB: predicated region body
PF: predicated region fallthrough
CT: control target
= control target key end

     0   :  { %s44_s0 = inlined_call_operand.vmem [shape: f32[2,1024], index: 0, kind: input, shape index: {}, may-alias: {0,1}]   ;;  %s45_s1 = inlined_call_operand.vmem [shape: f32[2,1024], index: 1, kind: output, shape index: {}, may-alias: {0,1}]  }
   0x1   :  { %v8_v0 = vld [vmem:[%s44_s0] sm:$0xff]  ;;  %v9_v1 = vld [vmem:[%s44_s0 + $0x8] sm:$0xff] }
   0x2   :  { %18 = vtanh.f32 %v8_v0 }
   0x3   :  { %20 = vtanh.f32 %v9_v1 }
   0x8   :  { %v19_v2 = vpop.eup %18 }
   0x9   :  { %v21_v3 = vpop.eup %20  ;;  %12 = vst [vmem:[%s45_s1] sm:$0xff] %v19_v2 }
   0xa   :  { %13 = vst [vmem:[%s45_s1 + $0x8] sm:$0xff] %v21_v3 }

</bundles_post_ra>
